<compile_context>
chip_gen: v5e
topology: v5e:2x2
jax: 0.10.0
libtpu: 0.0.40
codegen_flags: <defaults>
</compile_context>

<pallas_src>
import jax
import jax.numpy as jnp
from jax.experimental import pallas as pl
from jax.experimental.pallas import tpu as pltpu

_LANE = 128   # TPU lane width: hidden (lane) dims of the weights padded to this.


def _round_up(n, m):
    return ((n + m - 1) // m) * m


def _min_sublane(dtype):
    # Minimum second-minor tile granularity: (8,128) f32, (16,128) bf16, (32,128) int8/fp8.
    return max(8, 32 // jnp.dtype(dtype).itemsize)


def _vmem_cap_bytes():
    """Generation-aware VMEM budget (~80% of physical); 64 MiB fallback (valid on v7x too)."""
    try:
        return int(pltpu.get_tpu_info().vmem_capacity_bytes * 0.8)
    except Exception:
        return 64 << 20


def _decoder_kernel(x_ref, w1_ref, b1_ref, w2_ref, b2_ref, w3_ref, b3_ref, o_ref):
    """Fused 3-layer MLP on one batch tile: relu(relu(x@W1+b1)@W2+b2)@W3+b3.

    Weights/biases are whole-array blocks pinned in VMEM across grid steps (constant
    index_map); only the (tile_b, feat) activation tiles stream per step.  Matmuls
    accumulate in f32 on the MXU; bias-add / ReLU / casts run on the VPU in between.
    """
    x = x_ref[...].astype(w1_ref.dtype)   # in-kernel cast to the compute dtype

    h = jnp.dot(x, w1_ref[...], preferred_element_type=jnp.float32) + b1_ref[...]
    h = jnp.maximum(h, 0.0).astype(w2_ref.dtype)

    h = jnp.dot(h, w2_ref[...], preferred_element_type=jnp.float32) + b2_ref[...]
    h = jnp.maximum(h, 0.0).astype(w3_ref.dtype)

    out = jnp.dot(h, w3_ref[...], preferred_element_type=jnp.float32) + b3_ref[...]
    o_ref[...] = out.astype(o_ref.dtype)


def prepare_decoder_params(params, compute_dtype=jnp.bfloat16):
    """One-time pad + cast of the Decoder parameters (hoisted off the forward path).

    Only the hidden (lane) dims are padded to multiples of 128; the K dim of w1 and
    the output dim of w3 stay unpadded (blocks whose dim equals the full array dim
    are legal).  Zero padding is numerically exact.  Biases stay f32 (they are added
    to the f32 MXU accumulator in-kernel).
    """
    z_dim, hidden = params["w1"].shape
    out_dim = params["w3"].shape[1]
    hp = _round_up(hidden, _LANE)

    w1 = jnp.zeros((z_dim, hp), compute_dtype).at[:, :hidden].set(
        params["w1"].astype(compute_dtype))
    w2 = jnp.zeros((hp, hp), compute_dtype).at[:hidden, :hidden].set(
        params["w2"].astype(compute_dtype))
    w3 = jnp.zeros((hp, out_dim), compute_dtype).at[:hidden, :].set(
        params["w3"].astype(compute_dtype))
    b1 = jnp.zeros((1, hp), jnp.float32).at[:, :hidden].set(
        params["b1"].astype(jnp.float32).reshape(1, hidden))
    b2 = jnp.zeros((1, hp), jnp.float32).at[:, :hidden].set(
        params["b2"].astype(jnp.float32).reshape(1, hidden))
    b3 = params["b3"].astype(jnp.float32).reshape(1, out_dim)
    return {"w1": w1, "b1": b1, "w2": w2, "b2": b2, "w3": w3, "b3": b3}


def decoder_forward(x, prepared, head_id: int = 0, *, tile_b: int = 512,
                    out_dtype=jnp.float32):
    """Pallas-backed forward pass of Decoder: y = relu(relu(x@W1+b1)@W2+b2)@W3+b3.

    Args:
      x:         [batch, z_dim] activations (any float dtype; cast in-kernel).
      prepared:  output of prepare_decoder_params (padded + pre-cast weights).
      head_id:   unused (the PyTorch forward ignores it too).
      tile_b:    max batch rows per grid step.  Large default: weights are resident,
                 so bigger tiles just amortize per-step overhead and fill the MXU M dim.
      out_dtype: output dtype (f32 keeps the module semantics; bf16 halves writeback).
    Returns:
      [batch, output_dim] array of out_dtype.
    """
    del head_id
    w1, b1 = prepared["w1"], prepared["b1"]
    w2, b2 = prepared["w2"], prepared["b2"]
    w3, b3 = prepared["w3"], prepared["b3"]

    batch, z_dim = x.shape
    assert w1.shape[0] == z_dim, "x feature dim must match prepared w1"
    hp = w1.shape[1]
    out_dim = w3.shape[1]

    # Batch tiling: respect the sublane granularity of the x / out blocks, keep the
    # tile large, and prefer an even grid count so the two v7x TensorCores balance.
    gran = max(_min_sublane(x.dtype), _min_sublane(out_dtype))
    tile_b = max(gran, min(tile_b, _round_up(batch, gran)))
    tile_b = _round_up(tile_b, gran)
    grid_b = pl.cdiv(batch, tile_b)
    if grid_b > 1 and grid_b % 2 != 0:
        cand = _round_up(pl.cdiv(batch, grid_b + 1), gran)
        if cand > 0 and pl.cdiv(batch, cand) % 2 == 0:
            tile_b = cand
            grid_b = pl.cdiv(batch, cand)

    # VMEM budget.  The grid pipeline allocates two buffers per operand even for
    # constant-index (resident) weight blocks, so budget 2x for them; x/out tiles
    # are double-buffered; hidden activations are f32.
    w_isz = jnp.dtype(w1.dtype).itemsize
    x_isz = jnp.dtype(x.dtype).itemsize
    o_isz = jnp.dtype(out_dtype).itemsize
    weight_bytes = (z_dim * hp + hp * hp + hp * out_dim) * w_isz + (2 * hp + out_dim) * 4
    resident_bytes = 2 * weight_bytes
    io_bytes = 2 * tile_b * (z_dim * x_isz + out_dim * o_isz)
    inter_bytes = 2 * tile_b * hp * 4
    vmem_limit = min(_vmem_cap_bytes(),
                     max(32 << 20, int(1.5 * (resident_bytes + io_bytes + inter_bytes))))
    # NOTE: if padded weights ever exceed this budget (very large hidden_dim on v7x's
    # 64 MiB VMEM), add a grid axis over the hidden/output (N) dim of w2/w3 instead
    # of shrinking tile_b.

    flops = 2 * batch * (z_dim * hp + hp * hp + hp * out_dim)
    bytes_accessed = batch * z_dim * x_isz + weight_bytes + batch * out_dim * o_isz
    cost = pl.CostEstimate(flops=flops, transcendentals=0, bytes_accessed=bytes_accessed)

    return pl.pallas_call(
        _decoder_kernel,
        out_shape=jax.ShapeDtypeStruct((batch, out_dim), out_dtype),
        grid=(grid_b,),
        in_specs=[
            pl.BlockSpec((tile_b, z_dim), lambda i: (i, 0)),   # x: streamed per batch tile
            pl.BlockSpec((z_dim, hp), lambda i: (0, 0)),       # w1: VMEM-resident
            pl.BlockSpec((1, hp), lambda i: (0, 0)),           # b1: resident
            pl.BlockSpec((hp, hp), lambda i: (0, 0)),          # w2: resident
            pl.BlockSpec((1, hp), lambda i: (0, 0)),           # b2: resident
            pl.BlockSpec((hp, out_dim), lambda i: (0, 0)),     # w3: resident
            pl.BlockSpec((1, out_dim), lambda i: (0, 0)),      # b3: resident
        ],
        out_specs=pl.BlockSpec((tile_b, out_dim), lambda i: (i, 0)),
        compiler_params=pltpu.CompilerParams(
            dimension_semantics=("parallel",),   # shard batch tiles across TCs (v7x)
            vmem_limit_bytes=vmem_limit,
        ),
        cost_estimate=cost,
    )(x, w1, b1, w2, b2, w3, b3)


def init_decoder_params(key, z_dim, hidden_dim, output_dim):
    """Deterministic synthetic parameters (PyTorch-Linear shapes, pre-transposed: y = x@W + b)."""
    ks = jax.random.split(key, 6)
    scale = 0.1
    return {
        "w1": scale * jax.random.normal(ks[0], (z_dim, hidden_dim), jnp.float32),
        "b1": scale * jax.random.normal(ks[1], (1, hidden_dim), jnp.float32),
        "w2": scale * jax.random.normal(ks[2], (hidden_dim, hidden_dim), jnp.float32),
        "b2": scale * jax.random.normal(ks[3], (1, hidden_dim), jnp.float32),
        "w3": scale * jax.random.normal(ks[4], (hidden_dim, output_dim), jnp.float32),
        "b3": scale * jax.random.normal(ks[5], (1, output_dim), jnp.float32),
    }


def decoder_ref(x, p):
    """Pure-JAX reference of the PyTorch forward, for correctness checking."""
    h = jax.nn.relu(x @ p["w1"] + p["b1"])
    h = jax.nn.relu(h @ p["w2"] + p["b2"])
    return h @ p["w3"] + p["b3"]


if __name__ == "__main__":
    key = jax.random.PRNGKey(0)
    k_x, k_p, k_x2 = jax.random.split(key, 3)

    batch, z_dim, hidden_dim = 8, 16, 32
    output_dim_list = [24]   # Decoder only uses output_dim_list[0]
    n_head = 1               # unused by the forward pass (as in PyTorch)

    x = jax.random.normal(k_x, (batch, z_dim), jnp.float32)
    params = init_decoder_params(k_p, z_dim, hidden_dim, output_dim_list[0])
    ref = decoder_ref(x, params)

    # One-time preparation (pad + cast) of the weights — hoisted off the forward path.
    prep_f32 = prepare_decoder_params(params, compute_dtype=jnp.float32)
    prep_bf16 = prepare_decoder_params(params, compute_dtype=jnp.bfloat16)

    # f32 compute path: strict check (zero-padding is numerically exact).
    out_f32 = jax.block_until_ready(decoder_forward(x, prep_f32, head_id=0))
    assert out_f32.shape == (batch, output_dim_list[0])
    assert jnp.allclose(out_f32, ref, atol=1e-5, rtol=1e-5), "f32 mismatch vs reference"

    # bf16 compute path (feeds the bf16-native MXU on v5e/v6e/v7x): loose tolerance.
    out_bf16 = jax.block_until_ready(decoder_forward(x, prep_bf16, head_id=0))
    assert out_bf16.shape == (batch, output_dim_list[0])
    assert jnp.allclose(out_bf16, ref, atol=3e-2, rtol=3e-2), "bf16 mismatch vs reference"

    # bf16 output path (halved writeback) — also exercises the bf16 sublane tile clamp.
    out_bf16o = jax.block_until_ready(
        decoder_forward(x, prep_bf16, head_id=0, out_dtype=jnp.bfloat16))
    assert out_bf16o.dtype == jnp.bfloat16
    assert jnp.allclose(out_bf16o.astype(jnp.float32), ref, atol=5e-2, rtol=5e-2), \
        "bf16-output mismatch vs reference"

    # Larger, ragged batch: exercises multi-tile grid + even-grid (2-TC) balancing.
    x_big = jax.random.normal(k_x2, (300, z_dim), jnp.float32)
    ref_big = decoder_ref(x_big, params)
    out_big = jax.block_until_ready(
        decoder_forward(x_big, prep_f32, head_id=0, tile_b=128))
    assert out_big.shape == (300, output_dim_list[0])
    assert jnp.allclose(out_big, ref_big, atol=1e-4, rtol=1e-4), "tiled mismatch vs reference"

    # Default (large) tile covering the whole ragged batch in one grid step.
    out_big2 = jax.block_until_ready(decoder_forward(x_big, prep_f32, head_id=0))
    assert jnp.allclose(out_big2, ref_big, atol=1e-4, rtol=1e-4), "big-tile mismatch vs reference"

    print("KERNEL_OK")
</pallas_src>

<mosaic_0001>
module attributes {stable_mosaic.version = 11 : i64} {
  func.func @_decoder_kernel(%arg0: i32, %arg1: memref<8x16xf32, #tpu.memory_space<vmem>>, %arg2: memref<16x128xf32, #tpu.memory_space<vmem>>, %arg3: memref<1x128xf32, #tpu.memory_space<vmem>>, %arg4: memref<128x128xf32, #tpu.memory_space<vmem>>, %arg5: memref<1x128xf32, #tpu.memory_space<vmem>>, %arg6: memref<128x24xf32, #tpu.memory_space<vmem>>, %arg7: memref<1x24xf32, #tpu.memory_space<vmem>>, %arg8: memref<8x24xf32, #tpu.memory_space<vmem>>) attributes {dimension_semantics = [#tpu.dimension_semantics<parallel>], iteration_bounds = array<i64: 1>, scalar_prefetch = 0 : i64, scratch_operands = 0 : i64, tpu.core_type = #tpu.core_type<tc>, window_params = [{transform_indices = @transform_0, window_bounds = array<i64: 8, 16>}, {pipeline_mode = #tpu.pipeline_mode<synchronous>, transform_indices = @transform_1, window_bounds = array<i64: 16, 128>}, {pipeline_mode = #tpu.pipeline_mode<synchronous>, transform_indices = @transform_2, window_bounds = array<i64: 1, 128>}, {pipeline_mode = #tpu.pipeline_mode<synchronous>, transform_indices = @transform_3, window_bounds = array<i64: 128, 128>}, {pipeline_mode = #tpu.pipeline_mode<synchronous>, transform_indices = @transform_4, window_bounds = array<i64: 1, 128>}, {pipeline_mode = #tpu.pipeline_mode<synchronous>, transform_indices = @transform_5, window_bounds = array<i64: 128, 24>}, {pipeline_mode = #tpu.pipeline_mode<synchronous>, transform_indices = @transform_6, window_bounds = array<i64: 1, 24>}, {transform_indices = @transform_7, window_bounds = array<i64: 8, 24>}]} {
    %c0 = arith.constant 0 : index
    %c0_0 = arith.constant 0 : index
    %0 = vector.load %arg1[%c0, %c0_0] : memref<8x16xf32, #tpu.memory_space<vmem>>, vector<8x16xf32>
    %c0_1 = arith.constant 0 : index
    %c0_2 = arith.constant 0 : index
    %1 = vector.load %arg2[%c0_1, %c0_2] : memref<16x128xf32, #tpu.memory_space<vmem>>, vector<16x128xf32>
    %cst = arith.constant dense<0.000000e+00> : vector<8x128xf32>
    %2 = tpu.matmul %0, %1, %cst {dimension_numbers = #tpu.dot_dimension_numbers<[1], [0], [0], [1], [0, 0, 1, 1], [], []>} : vector<8x16xf32>, vector<16x128xf32>, vector<8x128xf32> -> vector<8x128xf32>
    %c0_3 = arith.constant 0 : index
    %c0_4 = arith.constant 0 : index
    %3 = vector.load %arg3[%c0_3, %c0_4] : memref<1x128xf32, #tpu.memory_space<vmem>>, vector<1x128xf32>
    %4 = vector.broadcast %3 : vector<1x128xf32> to vector<8x128xf32>
    %5 = arith.addf %2, %4 : vector<8x128xf32>
    %cst_5 = arith.constant 0.000000e+00 : f32
    %6 = vector.broadcast %cst_5 : f32 to vector<8x128xf32>
    %7 = arith.maximumf %5, %6 : vector<8x128xf32>
    %c0_6 = arith.constant 0 : index
    %c0_7 = arith.constant 0 : index
    %8 = vector.load %arg4[%c0_6, %c0_7] : memref<128x128xf32, #tpu.memory_space<vmem>>, vector<128x128xf32>
    %cst_8 = arith.constant dense<0.000000e+00> : vector<8x128xf32>
    %9 = tpu.matmul %7, %8, %cst_8 {dimension_numbers = #tpu.dot_dimension_numbers<[1], [0], [0], [1], [0, 0, 1, 1], [], []>} : vector<8x128xf32>, vector<128x128xf32>, vector<8x128xf32> -> vector<8x128xf32>
    %c0_9 = arith.constant 0 : index
    %c0_10 = arith.constant 0 : index
    %10 = vector.load %arg5[%c0_9, %c0_10] : memref<1x128xf32, #tpu.memory_space<vmem>>, vector<1x128xf32>
    %11 = vector.broadcast %10 : vector<1x128xf32> to vector<8x128xf32>
    %12 = arith.addf %9, %11 : vector<8x128xf32>
    %cst_11 = arith.constant 0.000000e+00 : f32
    %13 = vector.broadcast %cst_11 : f32 to vector<8x128xf32>
    %14 = arith.maximumf %12, %13 : vector<8x128xf32>
    %c0_12 = arith.constant 0 : index
    %c0_13 = arith.constant 0 : index
    %15 = vector.load %arg6[%c0_12, %c0_13] : memref<128x24xf32, #tpu.memory_space<vmem>>, vector<128x24xf32>
    %cst_14 = arith.constant dense<0.000000e+00> : vector<8x24xf32>
    %16 = tpu.matmul %14, %15, %cst_14 {dimension_numbers = #tpu.dot_dimension_numbers<[1], [0], [0], [1], [0, 0, 1, 1], [], []>} : vector<8x128xf32>, vector<128x24xf32>, vector<8x24xf32> -> vector<8x24xf32>
    %c0_15 = arith.constant 0 : index
    %c0_16 = arith.constant 0 : index
    %17 = vector.load %arg7[%c0_15, %c0_16] : memref<1x24xf32, #tpu.memory_space<vmem>>, vector<1x24xf32>
    %18 = vector.broadcast %17 : vector<1x24xf32> to vector<8x24xf32>
    %19 = arith.addf %16, %18 : vector<8x24xf32>
    %c0_17 = arith.constant 0 : index
    %c0_18 = arith.constant 0 : index
    %20 = vector.load %arg8[%c0_17, %c0_18] : memref<8x24xf32, #tpu.memory_space<vmem>>, vector<8x24xf32>
    tpu.vector_store %arg8[%c0_17, %c0_18], %19 {strides = array<i32>} : memref<8x24xf32, #tpu.memory_space<vmem>>, vector<8x24xf32>,
    return
  }
  func.func @transform_0(%arg0: i32) -> (i32, i32) {
    %c0_i32 = arith.constant 0 : i32
    %c0_i32_0 = arith.constant 0 : i32
    return %arg0, %c0_i32 : i32, i32
  }
  func.func @transform_1(%arg0: i32) -> (i32, i32) {
    %c0_i32 = arith.constant 0 : i32
    %c0_i32_0 = arith.constant 0 : i32
    %c0_i32_1 = arith.constant 0 : i32
    return %c0_i32, %c0_i32_0 : i32, i32
  }
  func.func @transform_2(%arg0: i32) -> (i32, i32) {
    %c0_i32 = arith.constant 0 : i32
    %c0_i32_0 = arith.constant 0 : i32
    %c0_i32_1 = arith.constant 0 : i32
    return %c0_i32, %c0_i32_0 : i32, i32
  }
  func.func @transform_3(%arg0: i32) -> (i32, i32) {
    %c0_i32 = arith.constant 0 : i32
    %c0_i32_0 = arith.constant 0 : i32
    %c0_i32_1 = arith.constant 0 : i32
    return %c0_i32, %c0_i32_0 : i32, i32
  }
  func.func @transform_4(%arg0: i32) -> (i32, i32) {
    %c0_i32 = arith.constant 0 : i32
    %c0_i32_0 = arith.constant 0 : i32
    %c0_i32_1 = arith.constant 0 : i32
    return %c0_i32, %c0_i32_0 : i32, i32
  }
  func.func @transform_5(%arg0: i32) -> (i32, i32) {
    %c0_i32 = arith.constant 0 : i32
    %c0_i32_0 = arith.constant 0 : i32
    %c0_i32_1 = arith.constant 0 : i32
    return %c0_i32, %c0_i32_0 : i32, i32
  }
  func.func @transform_6(%arg0: i32) -> (i32, i32) {
    %c0_i32 = arith.constant 0 : i32
    %c0_i32_0 = arith.constant 0 : i32
    %c0_i32_1 = arith.constant 0 : i32
    return %c0_i32, %c0_i32_0 : i32, i32
  }
  func.func @transform_7(%arg0: i32) -> (i32, i32) {
    %c0_i32 = arith.constant 0 : i32
    %c0_i32_0 = arith.constant 0 : i32
    return %arg0, %c0_i32 : i32, i32
  }
}

</mosaic_0001>

<bundles_post_ra>
// kernel: tpu_custom_call.1
= control target key start
LH: loop header
LB: loop body
LE: loop exit
PB: predicated region body
PF: predicated region fallthrough
CT: control target
= control target key end

     0   :  { %vm34_vm0 = vcmask 130048   ;;  %s347_s0 = inlined_call_operand.vmem [shape: f32[8,16], index: 0, kind: input, shape index: {}]   ;;  %s348_s1 = inlined_call_operand.vmem [shape: f32[16,128], index: 1, kind: input, shape index: {}]   ;;  %s349_s2 = inlined_call_operand.vmem [shape: f32[1,128], index: 2, kind: input, shape index: {}]   ;;  %s350_s3 = inlined_call_operand.vmem [shape: f32[128,128], index: 3, kind: input, shape index: {}]   ;;  %s351_s4 = inlined_call_operand.vmem [shape: f32[1,128], index: 4, kind: input, shape index: {}]   ;;  %s352_s5 = inlined_call_operand.vmem [shape: f32[128,24], index: 5, kind: input, shape index: {}]   ;;  %s353_s6 = inlined_call_operand.vmem [shape: f32[1,24], index: 6, kind: input, shape index: {}]   ;;  %s354_s7 = inlined_call_operand.hbm [shape: f32[8,24], index: 7, kind: output, shape index: {}]  }
   0x1   :  { %v29_v0 = vld [vmem:[%s348_s1 + $0x8] sm:$0xff]  ;;  %v28_v1 = vld [vmem:[%s348_s1] sm:$0xff]  ;;  %v74_v3 = vld [vmem:[%s350_s3 + $0x78] sm:$0xff] }
   0x2   :  { %52 = vmatpush.msra.mxu0 %v29_v0  ;;  %v27_v2 = vld [vmem:[%s347_s0] sm:$0xff]  ;;  %v73_v4 = vld [vmem:[%s350_s3 + $0x70] sm:$0xff]  ;;  %79 = vmatpush.msra.mxu1 %v74_v3  ;;  %v72_v5 = vld [vmem:[%s350_s3 + $0x68] sm:$0xff] }
   0x3   :  { %v71_v6 = vld [vmem:[%s350_s3 + $0x60] sm:$0xff] }
   0x4   :  { %53 = vmatpush.msra.mxu0 %v28_v1  ;;  %80 = vmatpush.msra.mxu1 %v73_v4 }
   0x5   :  { %158 = vmatmul.msk.f32.vlgmr.msra.gmra.mxu0 %vm34_vm0, %v27_v2 }
   0x6   :  { %81 = vmatpush.msra.mxu1 %v72_v5 }
   0x7   :  { %12 = vsyncpa [#allocation3], 0  ;;  %v70_v7 = vld [vmem:[%s350_s3 + $0x58] sm:$0xff]  ;;  %v69_v8 = vld [vmem:[%s350_s3 + $0x50] sm:$0xff]  ;;  %s189_s22 = smov [#allocation2]   ;;  %s149_s26 = sshll.u32 %s354_s7, 4  ;;  %s150_s26 = int_to_ptr.hbm [resolvable:$true] %s149_s26 }
   0x8   :  { %82 = vmatpush.msra.mxu1 %v71_v6  ;;  %v68_v9 = vld [vmem:[%s350_s3 + $0x48] sm:$0xff]  ;;  %v67_v10 = vld [vmem:[%s350_s3 + $0x40] sm:$0xff]  ;;  %v66_v11 = vld [vmem:[%s350_s3 + $0x38] sm:$0xff]  ;;  %s147_s23 = sshll.u32 %s189_s22, 4  ;;  %vm140_vm1 = vcmask 195584   ;;  %s148_s23 = int_to_ptr.vmem [resolvable:$true] %s147_s23 }
   0x9   :  { %v65_v12 = vld [vmem:[%s350_s3 + $0x30] sm:$0xff]  ;;  %v64_v13 = vld [vmem:[%s350_s3 + $0x28] sm:$0xff]  ;;  %v63_v14 = vld [vmem:[%s350_s3 + $0x20] sm:$0xff] }
   0xa   :  { %83 = vmatpush.msra.mxu1 %v70_v7  ;;  %v62_v15 = vld [vmem:[%s350_s3 + $0x18] sm:$0xff]  ;;  %v61_v16 = vld [vmem:[%s350_s3 + $0x10] sm:$0xff]  ;;  %v60_v17 = vld [vmem:[%s350_s3 + $0x8] sm:$0xff] }
   0xb   :  { %v59_v18 = vld [vmem:[%s350_s3] sm:$0xff]  ;;  %v115_v19 = vld [vmem:[%s352_s5 + $0x78] sm:$0xff]  ;;  %v114_v20 = vld [vmem:[%s352_s5 + $0x70] sm:$0xff] }
   0xc   :  { %84 = vmatpush.msra.mxu1 %v69_v8  ;;  %120 = vmatpush.msra.mxu2 %v115_v19  ;;  %v113_v21 = vld [vmem:[%s352_s5 + $0x68] sm:$0xff]  ;;  %v112_v22 = vld [vmem:[%s352_s5 + $0x60] sm:$0xff]  ;;  %v111_v23 = vld [vmem:[%s352_s5 + $0x58] sm:$0xff] }
   0xd   :  { %v110_v24 = vld [vmem:[%s352_s5 + $0x50] sm:$0xff]  ;;  %v109_v25 = vld [vmem:[%s352_s5 + $0x48] sm:$0xff]  ;;  %v108_v26 = vld [vmem:[%s352_s5 + $0x40] sm:$0xff] }
   0xe   :  { %85 = vmatpush.msra.mxu1 %v68_v9  ;;  %121 = vmatpush.msra.mxu2 %v114_v20  ;;  %v107_v27 = vld [vmem:[%s352_s5 + $0x38] sm:$0xff]  ;;  %v106_v28 = vld [vmem:[%s352_s5 + $0x30] sm:$0xff]  ;;  %v105_v29 = vld [vmem:[%s352_s5 + $0x28] sm:$0xff] }
   0xf   :  { %v104_v30 = vld [vmem:[%s352_s5 + $0x20] sm:$0xff]  ;;  %v103_v31 = vld [vmem:[%s352_s5 + $0x18] sm:$0xff]  ;;  %v102_v36 = vld [vmem:[%s352_s5 + $0x10] sm:$0xff] }
  0x10   :  { %86 = vmatpush.msra.mxu1 %v67_v10  ;;  %122 = vmatpush.msra.mxu2 %v113_v21  ;;  %v160_v32 = vld [vmem:[%s349_s2] ss:$0 sm:$0xff]  ;;  %v101_v37 = vld [vmem:[%s352_s5 + $0x8] sm:$0xff] }
  0x11   :  { %v100_v38 = vld [vmem:[%s352_s5] sm:$0xff] }
  0x12   :  { %87 = vmatpush.msra.mxu1 %v66_v11  ;;  %123 = vmatpush.msra.mxu2 %v112_v22  ;;  %v161_v39 = vld [vmem:[%s351_s4] ss:$0 sm:$0xff] }
  0x13   :  { %v162_v43 = vld [vmem:[%s353_s6] ss:$0 sm:$0xff] }
  0x14   :  { %88 = vmatpush.msra.mxu1 %v65_v12  ;;  %124 = vmatpush.msra.mxu2 %v111_v23 }
  0x16   :  { %89 = vmatpush.msra.mxu1 %v64_v13  ;;  %125 = vmatpush.msra.mxu2 %v110_v24 }
  0x18   :  { %90 = vmatpush.msra.mxu1 %v63_v14  ;;  %126 = vmatpush.msra.mxu2 %v109_v25 }
  0x1a   :  { %91 = vmatpush.msra.mxu1 %v62_v15  ;;  %127 = vmatpush.msra.mxu2 %v108_v26 }
  0x1c   :  { %92 = vmatpush.msra.mxu1 %v61_v16  ;;  %128 = vmatpush.msra.mxu2 %v107_v27 }
  0x1e   :  { %93 = vmatpush.msra.mxu1 %v60_v17  ;;  %129 = vmatpush.msra.mxu2 %v106_v28 }
  0x20   :  { %94 = vmatpush.msra.mxu1 %v59_v18  ;;  %130 = vmatpush.msra.mxu2 %v105_v29 }
  0x22   :  { %131 = vmatpush.msra.mxu2 %v104_v30 }
  0x24   :  { %132 = vmatpush.msra.mxu2 %v103_v31 }
  0x26   :  { %133 = vmatpush.msra.mxu2 %v102_v36 }
  0x28   :  { %134 = vmatpush.msra.mxu2 %v101_v37 }
  0x2a   :  { %135 = vmatpush.msra.mxu2 %v100_v38 }
  0x82   :  { %v55_v33 = vpop.f32.mrf.mxu0 }
  0x83   :  { %v56_v34 = vadd.f32 %v160_v32, %v55_v33 }
  0x85   :  { %v58_v35 = vmax.f32 %v56_v34, 0.0 }
  0x87   :  { %95 = vmatmul.f32.vlgmr.msra.gmra.mxu1 %v58_v35 }
 0x104   :  { %v96_v40 = vpop.f32.mrf.mxu1 }
 0x105   :  { %v97_v41 = vadd.f32 %v161_v39, %v96_v40 }
 0x107   :  { %v99_v42 = vmax.f32 %v97_v41, 0.0 }
 0x109   :  { %136 = vmatmul.f32.vlgmr.msra.gmra.mxu2 %v99_v42 }
 0x18c   :  { %v137_v44 = vpop.f32.mrf.mxu2 }
 0x18d   :  { %v138_v45 = vadd.f32 %v162_v43, %v137_v44 }
 0x18f   :  { %141 = vst.msk [vmem:[#allocation2] sm:$0xff] %vm140_vm1, %v138_v45 }
 0x190   :  { %152 = dma.vmem_to_hbm [thread:$0]  %s148_s23, 128, %s150_s26, [#allocation3]  }
 0x191   :  { %187 = dma.done.wait [#allocation3], 128  }
 0x192   :  { %188 = vsyncadd [#allocation3], 4294967168 }
 0x193   :  { %157 = vsyncpa [#allocation3], 1 }

</bundles_post_ra>
